<compile_context>
chip_gen: v5e
topology: v5e:2x2
jax: 0.10.0
libtpu: 0.0.40
codegen_flags: <defaults>
</compile_context>

<pallas_src>
import jax
import jax.numpy as jnp
import numpy as np
from jax.experimental import pallas as pl
from jax.experimental.pallas import tpu as pltpu

GAMMA = 4.0        # Gaussian RBF: kernel(r) = exp(-GAMMA * r^2)
EPS = 1e-4
_NEG_BIG = -1e30   # exponent bias for padded data rows -> exp() == 0


def _round_up(x, m):
    return (x + m - 1) // m * m


def _pick_tile_q(q):
    """Lane-dense query tile (multiple of 128).

    Aims for >= 2 balanced tiles so the "parallel" q axis keeps both v7x
    TensorCores busy; capped at 1024 so (tile_n, tile_q) intermediates stay
    small.  On single-TC v5e/v6e the extra grid step only costs ~0.35 us.
    """
    q128 = max(128, _round_up(q, 128))
    if q128 <= 256:
        return q128
    return min(1024, _round_up(q128 // 2, 128))


def _splat_kernel(a_ref, b_ref, dv_ref, o_ref, acc_ref):
    # a_ref:   (TN, D+2)   [2g*d_pos | -g*||d||^2 | -g]   (pad rows: bias -1e30)
    # b_ref:   (D+2, TQ)   [q^T ; 1 ; ||q||^2]            (Q on the lane axis)
    # dv_ref:  (Cp+1, TN)  d_val^T zero-padded to Cp rows, plus a ones row
    # o_ref:   (Cp, TQ)    normalized output (lane-dense, full-sublane stores)
    # acc_ref: (Cp+1, TQ)  f32 accumulator: value rows + weight-sum row
    k = pl.program_id(1)

    @pl.when(k == 0)
    def _():
        acc_ref[...] = jnp.zeros_like(acc_ref)

    # exponent[n, q] = -g*(||d_n||^2 - 2 d_n.q_q + ||q_q||^2) = -g*dist^2  (MXU)
    e = jnp.dot(a_ref[...], b_ref[...], preferred_element_type=jnp.float32)
    e = jnp.minimum(e, 0.0)          # cancellation guard: dist^2 >= 0
    w = jnp.exp(e)                   # (TN, TQ), EUP

    # One MXU matmul accumulates both the values and the weight sum:
    #   acc[:Cp] += d_val^T @ w ;  acc[Cp] += ones @ w  (= wsum)
    acc_ref[...] += jnp.dot(dv_ref[...], w, preferred_element_type=jnp.float32)

    @pl.when(k == pl.num_programs(1) - 1)
    def _():
        cp = o_ref.shape[0]
        val = acc_ref[:cp, :]                            # (Cp, TQ)
        wsum = acc_ref[cp:, :]                           # (1,  TQ)
        inv = pl.reciprocal(EPS + wsum, approx=False)    # EUP, full precision
        o_ref[...] = val * inv


@jax.jit
def kernel_splatting_interpolate(q_pos, d_pos, d_val):
    """Pallas equivalent of KernelSplattingInterpolator.forward(q_pos)."""
    *lead, D = q_pos.shape
    N, C = d_val.shape

    q_flat = q_pos.reshape(-1, D).astype(jnp.float32)
    Q = q_flat.shape[0]

    tile_q = _pick_tile_q(Q)
    Qp = _round_up(Q, tile_q)

    # Reduction (N) tiling: single step for small N; 512-row tiles otherwise so
    # the (tile_n, tile_q) f32 intermediates never outgrow v7x's 64 MiB VMEM.
    if N <= 1024:
        tile_n, Np = N, N
    else:
        tile_n = 512
        Np = _round_up(N, tile_n)
    n_steps = Np // tile_n

    Cp = _round_up(C, 8)   # full-sublane, unmasked (Cp, TQ) output stores

    # --- data-side operands (depend only on module params d_pos / d_val) ---
    d32 = d_pos.astype(jnp.float32)
    v32 = d_val.astype(jnp.float32)
    d_sq = jnp.sum(d32 * d32, axis=-1, keepdims=True)                  # (N, 1)
    a = jnp.concatenate(
        [2.0 * GAMMA * d32, -GAMMA * d_sq,
         jnp.full((N, 1), -GAMMA, jnp.float32)], axis=1)               # (N, D+2)
    dv_aug = jnp.concatenate(
        [v32, jnp.zeros((N, Cp - C), jnp.float32),
         jnp.ones((N, 1), jnp.float32)], axis=1).T                     # (Cp+1, N)
    if Np != N:
        # Padded data rows: huge negative bias -> w == 0 -> no contribution.
        a_pad = jnp.zeros((Np - N, D + 2), jnp.float32).at[:, D].set(_NEG_BIG)
        a = jnp.concatenate([a, a_pad], axis=0)
        dv_aug = jnp.pad(dv_aug, ((0, 0), (0, Np - N)))

    # --- query-side operand: B = [q^T ; 1 ; ||q||^2], Q on the lane axis ---
    if Qp != Q:
        q_flat = jnp.pad(q_flat, ((0, Qp - Q), (0, 0)))
    q_sq = jnp.sum(q_flat * q_flat, axis=-1)[None, :]                  # (1, Qp)
    b = jnp.concatenate(
        [q_flat.T, jnp.ones((1, Qp), jnp.float32), q_sq], axis=0)      # (D+2, Qp)

    # Data operands never change across the grid when n_steps == 1; skip the
    # dead second pipeline buffer in that case.
    data_kw = dict(pipeline_mode=pl.Buffered(1)) if n_steps == 1 else {}

    out = pl.pallas_call(
        _splat_kernel,
        out_shape=jax.ShapeDtypeStruct((Cp, Qp), jnp.float32),
        grid_spec=pltpu.PrefetchScalarGridSpec(
            num_scalar_prefetch=0,
            grid=(Qp // tile_q, n_steps),
            in_specs=[
                pl.BlockSpec((tile_n, D + 2), lambda i, k: (k, 0), **data_kw),
                pl.BlockSpec((D + 2, tile_q), lambda i, k: (0, i)),
                pl.BlockSpec((Cp + 1, tile_n), lambda i, k: (0, k), **data_kw),
            ],
            out_specs=pl.BlockSpec((Cp, tile_q), lambda i, k: (0, i)),
            scratch_shapes=[pltpu.VMEM((Cp + 1, tile_q), jnp.float32)],
        ),
        compiler_params=pltpu.CompilerParams(
            dimension_semantics=("parallel", "arbitrary")),
    )(a, b, dv_aug)

    # (Cp, Qp) -> (..., C).  Slice + transpose + reshape fuse into one XLA copy.
    return out[:C, :Q].T.reshape(*lead, C)


def _reference(q_pos, d_pos, d_val):
    """Pure-JAX reference mirroring the PyTorch query()/forward() semantics."""
    diff = q_pos[..., None, :] - d_pos            # (..., N, D)
    r = jnp.linalg.norm(diff, axis=-1)            # (..., N)
    w = jnp.exp(-GAMMA * r * r)                   # kernel(r)
    val = jnp.einsum("...n,nc->...c", w, d_val)
    wsum = jnp.sum(w, axis=-1)
    return val / (EPS + wsum[..., None])


if __name__ == "__main__":
    key = jax.random.PRNGKey(0)
    k1, k2, k3 = jax.random.split(key, 3)

    # Module parameters: N data points in D dims carrying C-dim values.
    N, D, C = 64, 3, 4
    d_pos = jax.random.uniform(k1, (N, D), jnp.float32)
    d_val = jax.random.normal(k2, (N, C), jnp.float32)

    # Query positions: batch=2, spatial=16x16, D coords -> (2, 16, 16, 3)
    q_pos = jax.random.uniform(k3, (2, 16, 16, D), jnp.float32)

    out = kernel_splatting_interpolate(q_pos, d_pos, d_val)
    out = jax.block_until_ready(out)

    ref = _reference(q_pos, d_pos, d_val)
    np.testing.assert_allclose(np.asarray(out), np.asarray(ref),
                               rtol=2e-4, atol=2e-4)

    print("KERNEL_OK")
</pallas_src>

<mosaic_0001>
module attributes {stable_mosaic.version = 11 : i64} {
  func.func @_splat_kernel(%arg0: i32, %arg1: i32, %arg2: memref<64x5xf32, #tpu.memory_space<vmem>>, %arg3: memref<5x256xf32, #tpu.memory_space<vmem>>, %arg4: memref<9x64xf32, #tpu.memory_space<vmem>>, %arg5: memref<8x256xf32, #tpu.memory_space<vmem>>, %arg6: memref<9x256xf32, #tpu.memory_space<vmem>>) attributes {dimension_semantics = [#tpu.dimension_semantics<parallel>, #tpu.dimension_semantics<arbitrary>], iteration_bounds = array<i64: 2, 1>, scalar_prefetch = 0 : i64, scratch_operands = 1 : i64, tpu.core_type = #tpu.core_type<tc>, window_params = [{pipeline_mode = #tpu.pipeline_mode<synchronous>, transform_indices = @transform_0, window_bounds = array<i64: 64, 5>}, {transform_indices = @transform_1, window_bounds = array<i64: 5, 256>}, {pipeline_mode = #tpu.pipeline_mode<synchronous>, transform_indices = @transform_2, window_bounds = array<i64: 9, 64>}, {transform_indices = @transform_3, window_bounds = array<i64: 8, 256>}]} {
    %c0_i32 = arith.constant 0 : i32
    %0 = arith.cmpi eq, %arg1, %c0_i32 : i32
    %1 = arith.extui %0 : i1 to i32
    %c0_i32_0 = arith.constant 0 : i32
    %2 = arith.cmpi ne, %1, %c0_i32_0 : i32
    scf.if %2 {
      %cst_14 = arith.constant 0.000000e+00 : f32
      %17 = vector.broadcast %cst_14 : f32 to vector<9x256xf32>
      %c0_15 = arith.constant 0 : index
      %c0_16 = arith.constant 0 : index
      %18 = vector.load %arg6[%c0_15, %c0_16] : memref<9x256xf32, #tpu.memory_space<vmem>>, vector<9x256xf32>
      tpu.vector_store %arg6[%c0_15, %c0_16], %17 {strides = array<i32>} : memref<9x256xf32, #tpu.memory_space<vmem>>, vector<9x256xf32>,
    } else {
    }
    %c0 = arith.constant 0 : index
    %c0_1 = arith.constant 0 : index
    %3 = vector.load %arg2[%c0, %c0_1] : memref<64x5xf32, #tpu.memory_space<vmem>>, vector<64x5xf32>
    %c0_2 = arith.constant 0 : index
    %c0_3 = arith.constant 0 : index
    %4 = vector.load %arg3[%c0_2, %c0_3] : memref<5x256xf32, #tpu.memory_space<vmem>>, vector<5x256xf32>
    %cst = arith.constant dense<0.000000e+00> : vector<64x256xf32>
    %5 = tpu.matmul %3, %4, %cst {dimension_numbers = #tpu.dot_dimension_numbers<[1], [0], [0], [1], [0, 0, 1, 1], [], []>} : vector<64x5xf32>, vector<5x256xf32>, vector<64x256xf32> -> vector<64x256xf32>
    %cst_4 = arith.constant 0.000000e+00 : f32
    %6 = vector.broadcast %cst_4 : f32 to vector<64x256xf32>
    %7 = arith.minimumf %5, %6 : vector<64x256xf32>
    %8 = math.exp %7 : vector<64x256xf32>
    %c0_5 = arith.constant 0 : index
    %c0_6 = arith.constant 0 : index
    %9 = vector.load %arg6[%c0_5, %c0_6] : memref<9x256xf32, #tpu.memory_space<vmem>>, vector<9x256xf32>
    %c0_7 = arith.constant 0 : index
    %c0_8 = arith.constant 0 : index
    %10 = vector.load %arg4[%c0_7, %c0_8] : memref<9x64xf32, #tpu.memory_space<vmem>>, vector<9x64xf32>
    %cst_9 = arith.constant dense<0.000000e+00> : vector<9x256xf32>
    %11 = tpu.matmul %10, %8, %cst_9 {dimension_numbers = #tpu.dot_dimension_numbers<[1], [0], [0], [1], [0, 0, 1, 1], [], []>} : vector<9x64xf32>, vector<64x256xf32>, vector<9x256xf32> -> vector<9x256xf32>
    %12 = arith.addf %9, %11 : vector<9x256xf32>
    %c0_10 = arith.constant 0 : index
    %c0_11 = arith.constant 0 : index
    %13 = vector.load %arg6[%c0_10, %c0_11] : memref<9x256xf32, #tpu.memory_space<vmem>>, vector<9x256xf32>
    tpu.vector_store %arg6[%c0_10, %c0_11], %12 {strides = array<i32>} : memref<9x256xf32, #tpu.memory_space<vmem>>, vector<9x256xf32>,
    %c0_i32_12 = arith.constant 0 : i32
    %14 = arith.cmpi eq, %arg1, %c0_i32_12 : i32
    %15 = arith.extui %14 : i1 to i32
    %c0_i32_13 = arith.constant 0 : i32
    %16 = arith.cmpi ne, %15, %c0_i32_13 : i32
    scf.if %16 {
      %c0_14 = arith.constant 0 : index
      %c0_15 = arith.constant 0 : index
      %17 = vector.load %arg6[%c0_14, %c0_15] : memref<9x256xf32, #tpu.memory_space<vmem>>, vector<8x256xf32>
      %c8 = arith.constant 8 : index
      %c0_16 = arith.constant 0 : index
      %18 = vector.load %arg6[%c8, %c0_16] : memref<9x256xf32, #tpu.memory_space<vmem>>, vector<1x256xf32>
      %cst_17 = arith.constant 9.99999974E-5 : f32
      %19 = vector.broadcast %cst_17 : f32 to vector<1x256xf32>
      %20 = arith.addf %19, %18 : vector<1x256xf32>
      %21 = tpu.reciprocal %20 : vector<1x256xf32> -> vector<1x256xf32>
      %22 = vector.broadcast %21 : vector<1x256xf32> to vector<8x256xf32>
      %23 = arith.mulf %17, %22 : vector<8x256xf32>
      %c0_18 = arith.constant 0 : index
      %c0_19 = arith.constant 0 : index
      %24 = vector.load %arg5[%c0_18, %c0_19] : memref<8x256xf32, #tpu.memory_space<vmem>>, vector<8x256xf32>
      tpu.vector_store %arg5[%c0_18, %c0_19], %23 {strides = array<i32>} : memref<8x256xf32, #tpu.memory_space<vmem>>, vector<8x256xf32>,
    } else {
    }
    return
  }
  func.func @transform_0(%arg0: i32, %arg1: i32) -> (i32, i32) {
    %c0_i32 = arith.constant 0 : i32
    %c0_i32_0 = arith.constant 0 : i32
    return %arg1, %c0_i32 : i32, i32
  }
  func.func @transform_1(%arg0: i32, %arg1: i32) -> (i32, i32) {
    %c0_i32 = arith.constant 0 : i32
    %c0_i32_0 = arith.constant 0 : i32
    return %c0_i32, %arg0 : i32, i32
  }
  func.func @transform_2(%arg0: i32, %arg1: i32) -> (i32, i32) {
    %c0_i32 = arith.constant 0 : i32
    %c0_i32_0 = arith.constant 0 : i32
    return %c0_i32, %arg1 : i32, i32
  }
  func.func @transform_3(%arg0: i32, %arg1: i32) -> (i32, i32) {
    %c0_i32 = arith.constant 0 : i32
    %c0_i32_0 = arith.constant 0 : i32
    return %c0_i32, %arg0 : i32, i32
  }
}

</mosaic_0001>

<bundles_post_ra>
// kernel: kernel_splatting_interpolate.1
= control target key start
LH: loop header
LB: loop body
LE: loop exit
PB: predicated region body
PF: predicated region fallthrough
CT: control target
= control target key end

     0   :  { %s739_s12 = smov 0   ;;  %s741_s13 = smov 0   ;;  %s838_s0 = inlined_call_operand.vmem [shape: f32[64,5], index: 0, kind: input, shape index: {}]   ;;  %s839_s1 = inlined_call_operand.vmem [shape: f32[5,512], index: 1, kind: input, shape index: {}]   ;;  %s840_s2 = inlined_call_operand.vmem [shape: f32[9,64], index: 2, kind: input, shape index: {}]   ;;  %s841_s3 = inlined_call_operand.vmem [shape: f32[8,512], index: 3, kind: output, shape index: {}]  }
   0x1   :  { %s743_s14 = smov 0  }
   0x2 LB: > { %s25_s15 = sadd.s32 1, %s712_s13  ;;  %p604_p0 = scmp.ge.s32.totalorder %s716_s14, 1  ;;  %s716_s14 = sphi %s743_s14, %s13_s14   ;;  %s712_s13 = sphi %s741_s13, %s843_s13   ;;  %s708_s12 = sphi %s739_s12, %s842_s12  }
   0x3   : > { %p27_p1 = scmp.ge.s32.totalorder %s25_s15, 2  ;;  %p170_p2 = scmp.lt.s32.totalorder %s716_s14, 3 }
   0x5   : > { %s845_s15 = smov (%p27_p1, %s25_s15), 0  ;;  %p171_p3 = pnand %p604_p0, %p170_p2 }
   0x6   : > { %s605_s16 = sshll.u32 (!%p171_p3), %s708_s12, 1 }
   0x7   : > { %174 = sbr.rel (%p171_p3) target bundleno = 380 (0x17c), region = 32  ;;  %p210_p4 = scmp.lt.s32.totalorder (!%p171_p3), %s605_s16, 3 }
   0xc   : > { %s847_s16 = smov (!%p210_p4, %s605_s16), 3  ;;  %vm268_vm0 = vcmask 1044480   ;;  %v233_v0 = vld [vmem:[%s838_s0] sm:$0xff]  ;;  %vm243_vm1 = vcmask 39936   ;;  %v238_v3 = vld [vmem:[%s838_s0 + $0x28] sm:$0xff]  ;;  %v239_v4 = vld [vmem:[%s838_s0 + $0x30] sm:$0xff] }
   0xd   : > { %s606_s17 = sshll.u32 %s847_s16, 3  ;;  %v234_v5 = vld [vmem:[%s838_s0 + $0x8] sm:$0xff]  ;;  %v240_v6 = vld [vmem:[%s838_s0 + $0x38] sm:$0xff]  ;;  %v235_v7 = vld [vmem:[%s838_s0 + $0x10] sm:$0xff]  ;;  %v718_v51 = vmov 0.0   ;;  %vm411_vm2 = vcmask 523264  }
   0xe   : > { %s213_s20 = scalar_lea.vmem %s839_s1, %s606_s17  ;;  %v236_v8 = vld [vmem:[%s838_s0 + $0x18] sm:$0xff]  ;;  %v237_v9 = vld [vmem:[%s838_s0 + $0x20] sm:$0xff]  ;;  %231 = vst [vmem:[#allocation2 + $0x10] sm:$0x1] %v718_v51  ;;  %s223_s21 = scalar_lea.vmem %s841_s3, %s606_s17 }
   0xf   : > { %v241_v1 = vld [vmem:[%s213_s20] sm:$0x1f]  ;;  %v242_v2 = vld [vmem:[%s213_s20 + $0x8] sm:$0x1f]  ;;  %232 = vst [vmem:[#allocation2 + $0x18] sm:$0x1] %v718_v51 }
  0x10   : > { %609 = vmatpush.msk.msra.mxu0 %vm268_vm0, %v241_v1  ;;  %618 = vmatpush.msk.msra.mxu1 %vm268_vm0, %v242_v2 }
  0x11   : > { %634 = vmatpush.msk.msra.mxu3 %vm268_vm0, %v242_v2  ;;  %610 = vmatmul.msk.f32.vlgmr.msra.gmra.mxu0 %vm243_vm1, %v233_v0 }
  0x12   : > { %619 = vmatmul.msk.f32.vlgmr.msra.gmra.mxu1 %vm243_vm1, %v233_v0  ;;  %624 = vmatmul.msk.f32.vlgmr.msra.gmra.mxu3 %vm243_vm1, %v238_v3 }
  0x13   : > { %633 = vmatpush.msk.msra.mxu2 %vm268_vm0, %v241_v1 }
  0x14   : > { %616 = vmatmul.msk.f32.vlgmr.msra.gmra.mxu2 %vm243_vm1, %v239_v4 }
  0x19   : > { %611 = vmatmul.msk.f32.gmra.mxu0 %vm243_vm1, %v234_v5 }
  0x1a   : > { %620 = vmatmul.msk.f32.gmra.mxu1 %vm243_vm1, %v234_v5  ;;  %625 = vmatmul.msk.f32.gmra.mxu3 %vm243_vm1, %v239_v4  ;;  %v409_v5 = vld [vmem:[%s840_s2] sm:$0xff] }
  0x1c   : > { %617 = vmatmul.msk.f32.gmra.mxu2 %vm243_vm1, %v240_v6 }
  0x21   : > { %612 = vmatmul.msk.f32.gmra.mxu0 %vm243_vm1, %v235_v7 }
  0x22   : > { %621 = vmatmul.msk.f32.gmra.mxu1 %vm243_vm1, %v235_v7  ;;  %626 = vmatmul.msk.f32.gmra.mxu3 %vm243_vm1, %v240_v6 }
  0x29   : > { %613 = vmatmul.msk.f32.gmra.mxu0 %vm243_vm1, %v236_v8 }
  0x2a   : > { %622 = vmatmul.msk.f32.gmra.mxu1 %vm243_vm1, %v236_v8 }
  0x31   : > { %614 = vmatmul.msk.f32.gmra.mxu0 %vm243_vm1, %v237_v9 }
  0x32   : > { %623 = vmatmul.msk.f32.gmra.mxu1 %vm243_vm1, %v237_v9 }
  0x39   : > { %615 = vmatmul.msk.f32.gmra.mxu0 %vm243_vm1, %v238_v3 }
  0x8e   : > { %v805_v10 = vpop.f32.mrf.mxu0 }
  0x8f   : > { %v333_v11 = vpop.f32.mrf.mxu1  ;;  %v357_v62 = vmin.f32 %v805_v10, 0.0 }
  0x90   : > { %v358_v46 = vmin.f32 %v333_v11, 0.0  ;;  %v410_v11 = vld [vmem:[%s840_s2 + $0x8] sm:$0x1] }
  0x91   : > { %v373_v4 = vmul.f32 1.442695, %v357_v62 }
  0x92   : > { %v375_v54 = vmul.f32 1.442695, %v358_v46 }
  0x95   : > { %v348_v12 = vpop.f32.mrf.mxu3 }
  0x96   : > { %v807_v13 = vpop.f32.mrf.mxu0  ;;  %v368_v27 = vmin.f32 %v348_v12, 0.0 }
  0x97   : > { %v336_v14 = vpop.f32.mrf.mxu1  ;;  %v310_v15 = vpop.f32.mrf.mxu2  ;;  %v359_v60 = vmin.f32 %v807_v13, 0.0 }
  0x98   : > { %v369_v16 = vmin.f32 %v310_v15, 0.0  ;;  %v395_v33 = vmul.f32 1.442695, %v368_v27  ;;  %v360_v43 = vmin.f32 %v336_v14, 0.0  ;;  %v408_v14 = vld [vmem:[#allocation2 + $0x18] sm:$0x1] }
  0x99   : > { %v377_v1 = vmul.f32 1.442695, %v359_v60 }
  0x9a   : > { %v397_v21 = vmul.f32 1.442695, %v369_v16  ;;  %v379_v49 = vmul.f32 1.442695, %v360_v43 }
  0x9c   : > { %660 = vpow2.f32 %v397_v21 }
  0x9d   : > { %v351_v17 = vpop.f32.mrf.mxu3 }
  0x9e   : > { %v809_v18 = vpop.f32.mrf.mxu0  ;;  %v370_v23 = vmin.f32 %v351_v17, 0.0 }
  0x9f   : > { %v339_v19 = vpop.f32.mrf.mxu1  ;;  %v313_v20 = vpop.f32.mrf.mxu2  ;;  %v361_v56 = vmin.f32 %v809_v18, 0.0  ;;  %v407_v18 = vld [vmem:[#allocation2 + $0x10] sm:$0x1] }
  0xa0   : > { %v371_v22 = vmin.f32 %v313_v20, 0.0  ;;  %v399_v25 = vmul.f32 1.442695, %v370_v23  ;;  %v362_v41 = vmin.f32 %v339_v19, 0.0 }
  0xa1   : > { %v381_v63 = vmul.f32 1.442695, %v361_v56 }
  0xa2   : > { %v401_v24 = vmul.f32 1.442695, %v371_v22  ;;  %v661_v32 = vpop.eup %660  ;;  %v383_v47 = vmul.f32 1.442695, %v362_v41 }
  0xa4   : > { %662 = vpow2.f32 %v401_v24 }
  0xa5   : > { %v354_v26 = vpop.f32.mrf.mxu3  ;;  %664 = vpow2.f32 %v399_v25 }
  0xa6   : > { %v372_v28 = vmin.f32 %v354_v26, 0.0  ;;  %v301_v29 = vpop.f32.mrf.mxu0 }
  0xa7   : > { %v342_v30 = vpop.f32.mrf.mxu1  ;;  %v363_v52 = vmin.f32 %v301_v29, 0.0 }
  0xa8   : > { %v403_v31 = vmul.f32 1.442695, %v372_v28  ;;  %v364_v35 = vmin.f32 %v342_v30, 0.0 }
  0xa9   : > { %v385_v61 = vmul.f32 1.442695, %v363_v52 }
  0xaa   : > { %666 = vpow2.f32 %v403_v31  ;;  %v663_v34 = vpop.eup %662  ;;  %v387_v38 = vmul.f32 1.442695, %v364_v35 }
  0xab   : > { %426 = vmatpush.msrb.mxu2 %v663_v34  ;;  %668 = vpow2.f32 %v395_v33  ;;  %v665_v37 = vpop.eup %664 }
  0xac   : > { %670 = vpow2.f32 %v387_v38 }
  0xad   : > { %427 = vmatpush.msrb.mxu2 %v661_v32 }
  0xae   : > { %v304_v36 = vpop.f32.mrf.mxu0 }
  0xaf   : > { %v345_v39 = vpop.f32.mrf.mxu1  ;;  %v365_v48 = vmin.f32 %v304_v36, 0.0 }
  0xb0   : > { %v667_v40 = vpop.eup %666  ;;  %v366_v42 = vmin.f32 %v345_v39, 0.0 }
  0xb1   : > { %449 = vmatpush.msrb.mxu3 %v667_v40  ;;  %v669_v45 = vpop.eup %668  ;;  %v389_v57 = vmul.f32 1.442695, %v365_v48 }
  0xb2   : > { %v391_v44 = vmul.f32 1.442695, %v366_v42  ;;  %v671_v55 = vpop.eup %670 }
  0xb3   : > { %450 = vmatpush.msrb.mxu3 %v665_v37 }
  0xb4   : > { %672 = vpow2.f32 %v391_v44 }
  0xb5   : > { %451 = vmatpush.msrb.mxu3 %v669_v45  ;;  %674 = vpow2.f32 %v383_v47 }
  0xb6   : > { %v307_v50 = vpop.f32.mrf.mxu0  ;;  %676 = vpow2.f32 %v379_v49 }
  0xb7   : > { %v367_v53 = vmin.f32 %v307_v50, 0.0 }
  0xb9   : > { %v393_v58 = vmul.f32 1.442695, %v367_v53 }
  0xba   : > { %v673_v59 = vpop.eup %672 }
  0xbb   : > { %678 = vpow2.f32 %v393_v58  ;;  %452 = vmatpush.msrb.mxu3 %v673_v59  ;;  %v675_v0 = vpop.eup %674 }
  0xbc   : > { %680 = vpow2.f32 %v375_v54  ;;  %v677_v2 = vpop.eup %676 }
  0xbd   : > { %682 = vpow2.f32 %v389_v57  ;;  %453 = vmatpush.msrb.mxu3 %v671_v55 }
  0xbe   : > { %684 = vpow2.f32 %v385_v61 }
  0xbf   : > { %454 = vmatpush.msrb.mxu3 %v675_v0  ;;  %686 = vpow2.f32 %v381_v63 }
  0xc0   : > { %688 = vpow2.f32 %v377_v1 }
  0xc1   : > { %v679_v3 = vpop.eup %678  ;;  %455 = vmatpush.msrb.mxu3 %v677_v2  ;;  %690 = vpow2.f32 %v373_v4 }
  0xc2   : > { %v681_v6 = vpop.eup %680  ;;  %428 = vmatpush.msrb.mxu2 %v679_v3 }
  0xc3   : > { %v683_v7 = vpop.eup %682  ;;  %456 = vmatpush.msrb.mxu3 %v681_v6 }
  0xc4   : > { %429 = vmatpush.msrb.mxu2 %v683_v7  ;;  %629 = vmatmul.msk.f32.vlgmr.msrb.gmra.mxu3 %vm411_vm2, %v409_v5  ;;  %v685_v8 = vpop.eup %684 }
  0xc5   : > { %v687_v9 = vpop.eup %686 }
  0xc6   : > { %430 = vmatpush.msrb.mxu2 %v685_v8  ;;  %v689_v10 = vpop.eup %688 }
  0xc7   : > { %v691_v12 = vpop.eup %690 }
  0xc8   : > { %431 = vmatpush.msrb.mxu2 %v687_v9 }
  0xca   : > { %432 = vmatpush.msrb.mxu2 %v689_v10 }
  0xcc   : > { %433 = vmatpush.msrb.mxu2 %v691_v12  ;;  %630 = vmatmul.msk.f32.gmra.mxu3 %vm411_vm2, %v410_v11 }
  0xcd   : > { %627 = vmatmul.msk.f32.vlgmr.msrb.gmra.mxu2 %vm411_vm2, %v409_v5 }
  0xd5   : > { %628 = vmatmul.msk.f32.gmra.mxu2 %vm411_vm2, %v410_v11 }
 0x147   : > { %v458_v13 = vpop.f32.mrf.mxu3 }
 0x14f   : > { %v461_v15 = vpop.f32.mrf.mxu3 }
 0x150   : > { %v435_v16 = vpop.f32.mrf.mxu2  ;;  %v467_v17 = vadd.f32 %v461_v15, %v408_v14 }
 0x152   : > { %471 = vst [vmem:[#allocation2 + $0x18] sm:$0x1] %v467_v17 }
 0x158   : > { %v438_v19 = vpop.f32.mrf.mxu2 }
 0x159   : > { %v466_v20 = vadd.f32 %v438_v19, %v407_v18 }
 0x15b   : > { %470 = vst [vmem:[#allocation2 + $0x10] sm:$0x1] %v466_v20 }
 0x162   : > { %v478_v21 = vld [vmem:[#allocation2 + $0x10] ss:$8 sm:$0x3] }
 0x163   : > { %v479_v22 = vadd.f32 0.0001, %v478_v21 }
 0x165   : > { %692 = vrcp.f32 %v479_v22  ;;  %v491_v26 = vand.u32 2147483648, %v479_v22  ;;  %v489_v28 = vand.u32 2147483647, %v479_v22  ;;  %vm485_vm4 = vweird.f32 %v479_v22 }
 0x167   : > { %v492_v30 = vor.u32 1.1754944e-38, %v491_v26  ;;  %vm490_vm6 = vcmp.eq.f32.partialorder %v489_v28, 8.507059e+37 }
 0x16b   : > { %v693_v23 = vpop.eup %692 }
 0x16c   : > { %v481_v24 = vmul.f32 %v693_v23, %v479_v22  ;;  %vm486_vm3 = vweird.f32 %v693_v23 }
 0x16d   : > { %vm487_vm5 = vmor %vm485_vm4, %vm486_vm3 }
 0x16e   : > { %v482_v25 = vsub.f32 1.0, %v481_v24 }
 0x170   : > { %v483_v27 = vmul.f32 %v693_v23, %v482_v25 }
 0x172   : > { %v484_v29 = vadd.f32 %v693_v23, %v483_v27 }
 0x174   : > { %v488_v31 = vsel %vm487_vm5, %v693_v23, %v484_v29 }
 0x175   : > { %v493_v32 = vsel %vm490_vm6, %v492_v30, %v488_v31 }
 0x176   : > { %v495_v33 = vperm.slane %v493_v32, 0  ;;  %v496_v34 = vperm.slane %v493_v32, 1 }
 0x178   : > { %v499_v35 = vmul.f32 %v495_v33, %v435_v16  ;;  %v500_v36 = vmul.f32 %v496_v34, %v458_v13 }
 0x17a   : > { %501 = vst [vmem:[%s223_s21] sm:$0xff] %v499_v35 }
 0x17b   : > { %502 = vst [vmem:[%s223_s21 + $0x8] sm:$0xff] %v500_v36 }
 0x17c PF: > { %s13_s14 = sadd.s32 1, %s716_s14   ;;  %s842_s12 = smov %s712_s13 }
 0x17d   : > { %p10_p5 = scmp.ge.s32.totalorder %s13_s14, 4   ;;  %s843_s13 = smov %s845_s15 }
 0x17f   :  { %12 = sbr.rel (!%p10_p5) target bundleno = 2 (0x2), region = 77 }

</bundles_post_ra>
